<compile_context>
chip_gen: v6e
topology: v6e:2x2x1
jax: 0.10.0
libtpu: 0.0.40
codegen_flags: <defaults>
</compile_context>

<pallas_src>
import jax
import jax.numpy as jnp
from jax.experimental import pallas as pl
from jax.experimental.pallas import tpu as pltpu

BN_EPS = 1e-5
NEG_SLOPE = 0.5


def _round_up(x, m):
    return ((x + m - 1) // m) * m


def residual_block_kernel(x_ref, gamma_ref, beta_ref, w_ref, b_ref, o_ref, acc_ref):
    """grid = (H_pad // tn, C_pad // tk); k (reduction over input features) innermost."""
    k = pl.program_id(1)

    @pl.when(k == 0)
    def _():
        acc_ref[...] = jnp.zeros_like(acc_ref)

    # --- BatchNorm1d with batch statistics (track_running_stats=False, biased var),
    #     then LeakyReLU(0.5); elementwise math kept in f32 (VPU/EUP path). ---
    x = x_ref[...].astype(jnp.float32)                       # (N, tk)
    mean = jnp.mean(x, axis=0, keepdims=True)                # (1, tk)
    var = jnp.mean((x - mean) ** 2, axis=0, keepdims=True)   # (1, tk)
    xhat = (x - mean) * jax.lax.rsqrt(var + BN_EPS)
    out = xhat * gamma_ref[...] + beta_ref[...]
    out = jnp.where(out >= 0, out, NEG_SLOPE * out)

    # --- Fused Linear + residual: out @ (W^T + I); bf16 MXU inputs, f32 accumulate. ---
    acc_ref[...] += jnp.dot(out.astype(jnp.bfloat16), w_ref[...],
                            preferred_element_type=jnp.float32)

    @pl.when(k == pl.num_programs(1) - 1)
    def _():
        o_ref[...] = (acc_ref[...] + b_ref[...]).astype(o_ref.dtype)


def prepare_params(gamma, beta, weight, bias, *, tk=128, tn=128):
    """One-time parameter prep (do NOT re-run per forward call).

    gamma/beta: (C,)  weight: torch-layout (H, C)  bias: (H,)
    Folds the residual into the weight (W^T + I), pads features to lane-dense
    128-multiples, and pre-casts the fused weight to bf16 for the MXU.
    """
    H, C = weight.shape
    if H != C:
        raise ValueError("ResidualBlock residual add requires hidden_size == input_size")
    C_pad = _round_up(C, tk)
    H_pad = _round_up(H, tn)

    w_fused = weight.astype(jnp.float32).T + jnp.eye(C, dtype=jnp.float32)   # (C, H)
    w_p = jnp.zeros((C_pad, H_pad), jnp.bfloat16).at[:C, :H].set(
        w_fused.astype(jnp.bfloat16))
    gamma_p = jnp.zeros((1, C_pad), jnp.float32).at[0, :C].set(gamma.astype(jnp.float32))
    beta_p = jnp.zeros((1, C_pad), jnp.float32).at[0, :C].set(beta.astype(jnp.float32))
    bias_p = jnp.zeros((1, H_pad), jnp.float32).at[0, :H].set(bias.astype(jnp.float32))

    return {"gamma": gamma_p, "beta": beta_p, "w": w_p, "bias": bias_p,
            "C": C, "H": H, "tk": tk, "tn": tn}


def residual_block(x, params):
    """x: (N, C) float; params: output of prepare_params(). Returns (N, H)."""
    N, C = x.shape
    assert C == params["C"], "feature dim mismatch"
    tk, tn = params["tk"], params["tn"]
    C_pad = params["gamma"].shape[1]
    H_pad = params["bias"].shape[1]
    H = params["H"]

    x_p = x if C_pad == C else jnp.pad(x, ((0, 0), (0, C_pad - C)))

    grid = (H_pad // tn, C_pad // tk)

    cost = pl.CostEstimate(
        flops=2 * N * C_pad * H_pad,
        transcendentals=0,
        bytes_accessed=(N * C_pad * 4 * grid[0]        # x re-read per H tile
                        + C_pad * H_pad * 2            # bf16 fused weight
                        + N * H_pad * 4                # output
                        + (2 * C_pad * 4) * grid[0]    # gamma/beta
                        + H_pad * 4),                  # bias
    )

    out_p = pl.pallas_call(
        residual_block_kernel,
        out_shape=jax.ShapeDtypeStruct((N, H_pad), x.dtype),
        grid_spec=pltpu.PrefetchScalarGridSpec(
            num_scalar_prefetch=0,
            grid=grid,
            in_specs=[
                pl.BlockSpec((N, tk), lambda j, k: (0, k)),    # x (full batch resident)
                pl.BlockSpec((1, tk), lambda j, k: (0, k)),    # gamma
                pl.BlockSpec((1, tk), lambda j, k: (0, k)),    # beta
                pl.BlockSpec((tk, tn), lambda j, k: (k, j)),   # fused weight (streamed)
                pl.BlockSpec((1, tn), lambda j, k: (0, j)),    # bias
            ],
            out_specs=pl.BlockSpec((N, tn), lambda j, k: (0, j)),
            scratch_shapes=[pltpu.VMEM((N, tn), jnp.float32)],
        ),
        compiler_params=pltpu.CompilerParams(
            dimension_semantics=("parallel", "arbitrary"),  # H tiles across TCs on v7x
            vmem_limit_bytes=32 * 1024 * 1024,              # safe on v5e/v6e/v7x
        ),
        cost_estimate=cost,
    )(x_p, params["gamma"], params["beta"], params["w"], params["bias"])

    return out_p[:, :H] if H_pad != H else out_p


def residual_block_ref(x, gamma, beta, weight, bias):
    """Pure-JAX f32 reference mirroring the PyTorch forward (training-mode BN)."""
    mean = jnp.mean(x, axis=0, keepdims=True)
    var = jnp.mean((x - mean) ** 2, axis=0, keepdims=True)
    out = (x - mean) / jnp.sqrt(var + BN_EPS) * gamma + beta
    out = jnp.where(out >= 0, out, NEG_SLOPE * out)
    dense = out @ weight.T + bias
    return out + dense


if __name__ == "__main__":
    # Small shapes consistent with the module: hidden_size == input_size so the
    # residual add is well-formed. (Features get padded to 128 lanes internally.)
    N = 8    # batch
    C = 32   # input_size
    H = 32   # hidden_size

    key = jax.random.PRNGKey(0)
    kx, kg, kb, kw, kbias = jax.random.split(key, 5)

    x = jax.random.normal(kx, (N, C), dtype=jnp.float32)
    gamma = 1.0 + 0.1 * jax.random.normal(kg, (C,), dtype=jnp.float32)
    beta = 0.1 * jax.random.normal(kb, (C,), dtype=jnp.float32)
    bound = 1.0 / jnp.sqrt(C)
    weight = jax.random.uniform(kw, (H, C), minval=-bound, maxval=bound,
                                dtype=jnp.float32)
    bias = jax.random.uniform(kbias, (H,), minval=-bound, maxval=bound,
                              dtype=jnp.float32)

    params = prepare_params(gamma, beta, weight, bias)   # one-time prep
    out = residual_block(x, params)
    out = jax.block_until_ready(out)

    ref = residual_block_ref(x, gamma, beta, weight, bias)
    assert out.shape == (N, H)
    # bf16 MXU inputs (residual folded through the identity) => looser tolerance
    # than a pure-f32 path.
    assert jnp.allclose(out, ref, atol=5e-2, rtol=5e-2), (
        f"max abs err = {jnp.max(jnp.abs(out - ref))}")

    print("KERNEL_OK")
</pallas_src>

<mosaic_0001>
module attributes {stable_mosaic.version = 11 : i64} {
  func.func @residual_block_kernel(%arg0: i32, %arg1: i32, %arg2: memref<8x128xf32, #tpu.memory_space<vmem>>, %arg3: memref<1x128xf32, #tpu.memory_space<vmem>>, %arg4: memref<1x128xf32, #tpu.memory_space<vmem>>, %arg5: memref<128x128xbf16, #tpu.memory_space<vmem>>, %arg6: memref<1x128xf32, #tpu.memory_space<vmem>>, %arg7: memref<8x128xf32, #tpu.memory_space<vmem>>, %arg8: memref<8x128xf32, #tpu.memory_space<vmem>>) attributes {dimension_semantics = [#tpu.dimension_semantics<parallel>, #tpu.dimension_semantics<arbitrary>], iteration_bounds = array<i64: 1, 1>, scalar_prefetch = 0 : i64, scratch_operands = 1 : i64, tpu.core_type = #tpu.core_type<tc>, window_params = [{transform_indices = @transform_0, window_bounds = array<i64: 8, 128>}, {transform_indices = @transform_1, window_bounds = array<i64: 1, 128>}, {transform_indices = @transform_2, window_bounds = array<i64: 1, 128>}, {transform_indices = @transform_3, window_bounds = array<i64: 128, 128>}, {transform_indices = @transform_4, window_bounds = array<i64: 1, 128>}, {transform_indices = @transform_5, window_bounds = array<i64: 8, 128>}]} {
    %c0_i32 = arith.constant 0 : i32
    %0 = arith.cmpi eq, %arg1, %c0_i32 : i32
    %1 = arith.extui %0 : i1 to i32
    %c0_i32_0 = arith.constant 0 : i32
    %2 = arith.cmpi ne, %1, %c0_i32_0 : i32
    scf.if %2 {
      %cst_21 = arith.constant 0.000000e+00 : f32
      %42 = vector.broadcast %cst_21 : f32 to vector<8x128xf32>
      %c0_22 = arith.constant 0 : index
      %c0_23 = arith.constant 0 : index
      %43 = vector.load %arg8[%c0_22, %c0_23] : memref<8x128xf32, #tpu.memory_space<vmem>>, vector<8x128xf32>
      tpu.vector_store %arg8[%c0_22, %c0_23], %42 {strides = array<i32>} : memref<8x128xf32, #tpu.memory_space<vmem>>, vector<8x128xf32>,
    } else {
    }
    %c0 = arith.constant 0 : index
    %c0_1 = arith.constant 0 : index
    %3 = vector.load %arg2[%c0, %c0_1] : memref<8x128xf32, #tpu.memory_space<vmem>>, vector<8x128xf32>
    %cst = arith.constant dense<0.000000e+00> : vector<128xf32>
    %4 = vector.multi_reduction <add>, %3, %cst [0] : vector<8x128xf32> to vector<128xf32>
    %5 = vector.shape_cast %4 : vector<128xf32> to vector<1x128xf32>
    %cst_2 = arith.constant 8.000000e+00 : f32
    %6 = vector.broadcast %cst_2 : f32 to vector<1x128xf32>
    %7 = arith.divf %5, %6 : vector<1x128xf32>
    %8 = vector.broadcast %7 : vector<1x128xf32> to vector<8x128xf32>
    %9 = arith.subf %3, %8 : vector<8x128xf32>
    %10 = arith.mulf %9, %9 : vector<8x128xf32>
    %cst_3 = arith.constant dense<0.000000e+00> : vector<128xf32>
    %11 = vector.multi_reduction <add>, %10, %cst_3 [0] : vector<8x128xf32> to vector<128xf32>
    %12 = vector.shape_cast %11 : vector<128xf32> to vector<1x128xf32>
    %cst_4 = arith.constant 8.000000e+00 : f32
    %13 = vector.broadcast %cst_4 : f32 to vector<1x128xf32>
    %14 = arith.divf %12, %13 : vector<1x128xf32>
    %15 = vector.broadcast %7 : vector<1x128xf32> to vector<8x128xf32>
    %16 = arith.subf %3, %15 : vector<8x128xf32>
    %cst_5 = arith.constant 9.99999974E-6 : f32
    %17 = vector.broadcast %cst_5 : f32 to vector<1x128xf32>
    %18 = arith.addf %14, %17 : vector<1x128xf32>
    %19 = math.rsqrt %18 : vector<1x128xf32>
    %20 = vector.broadcast %19 : vector<1x128xf32> to vector<8x128xf32>
    %21 = arith.mulf %16, %20 : vector<8x128xf32>
    %c0_6 = arith.constant 0 : index
    %c0_7 = arith.constant 0 : index
    %22 = vector.load %arg3[%c0_6, %c0_7] : memref<1x128xf32, #tpu.memory_space<vmem>>, vector<1x128xf32>
    %23 = vector.broadcast %22 : vector<1x128xf32> to vector<8x128xf32>
    %24 = arith.mulf %21, %23 : vector<8x128xf32>
    %c0_8 = arith.constant 0 : index
    %c0_9 = arith.constant 0 : index
    %25 = vector.load %arg4[%c0_8, %c0_9] : memref<1x128xf32, #tpu.memory_space<vmem>>, vector<1x128xf32>
    %26 = vector.broadcast %25 : vector<1x128xf32> to vector<8x128xf32>
    %27 = arith.addf %24, %26 : vector<8x128xf32>
    %cst_10 = arith.constant 0.000000e+00 : f32
    %28 = vector.broadcast %cst_10 : f32 to vector<8x128xf32>
    %29 = arith.cmpf oge, %27, %28 : vector<8x128xf32>
    %cst_11 = arith.constant 5.000000e-01 : f32
    %30 = vector.broadcast %cst_11 : f32 to vector<8x128xf32>
    %31 = arith.mulf %30, %27 : vector<8x128xf32>
    %32 = arith.select %29, %27, %31 : vector<8x128xi1>, vector<8x128xf32>
    %c0_12 = arith.constant 0 : index
    %c0_13 = arith.constant 0 : index
    %33 = vector.load %arg8[%c0_12, %c0_13] : memref<8x128xf32, #tpu.memory_space<vmem>>, vector<8x128xf32>
    %34 = arith.truncf %32 : vector<8x128xf32> to vector<8x128xbf16>
    %c0_14 = arith.constant 0 : index
    %c0_15 = arith.constant 0 : index
    %35 = vector.load %arg5[%c0_14, %c0_15] : memref<128x128xbf16, #tpu.memory_space<vmem>>, vector<128x128xbf16>
    %cst_16 = arith.constant dense<0.000000e+00> : vector<8x128xf32>
    %36 = tpu.matmul %34, %35, %cst_16 {dimension_numbers = #tpu.dot_dimension_numbers<[1], [0], [0], [1], [0, 0, 1, 1], [], []>} : vector<8x128xbf16>, vector<128x128xbf16>, vector<8x128xf32> -> vector<8x128xf32>
    %37 = arith.addf %33, %36 : vector<8x128xf32>
    %c0_17 = arith.constant 0 : index
    %c0_18 = arith.constant 0 : index
    %38 = vector.load %arg8[%c0_17, %c0_18] : memref<8x128xf32, #tpu.memory_space<vmem>>, vector<8x128xf32>
    tpu.vector_store %arg8[%c0_17, %c0_18], %37 {strides = array<i32>} : memref<8x128xf32, #tpu.memory_space<vmem>>, vector<8x128xf32>,
    %c0_i32_19 = arith.constant 0 : i32
    %39 = arith.cmpi eq, %arg1, %c0_i32_19 : i32
    %40 = arith.extui %39 : i1 to i32
    %c0_i32_20 = arith.constant 0 : i32
    %41 = arith.cmpi ne, %40, %c0_i32_20 : i32
    scf.if %41 {
      %c0_21 = arith.constant 0 : index
      %c0_22 = arith.constant 0 : index
      %42 = vector.load %arg8[%c0_21, %c0_22] : memref<8x128xf32, #tpu.memory_space<vmem>>, vector<8x128xf32>
      %c0_23 = arith.constant 0 : index
      %c0_24 = arith.constant 0 : index
      %43 = vector.load %arg6[%c0_23, %c0_24] : memref<1x128xf32, #tpu.memory_space<vmem>>, vector<1x128xf32>
      %44 = vector.broadcast %43 : vector<1x128xf32> to vector<8x128xf32>
      %45 = arith.addf %42, %44 : vector<8x128xf32>
      %c0_25 = arith.constant 0 : index
      %c0_26 = arith.constant 0 : index
      %46 = vector.load %arg7[%c0_25, %c0_26] : memref<8x128xf32, #tpu.memory_space<vmem>>, vector<8x128xf32>
      tpu.vector_store %arg7[%c0_25, %c0_26], %45 {strides = array<i32>} : memref<8x128xf32, #tpu.memory_space<vmem>>, vector<8x128xf32>,
    } else {
    }
    return
  }
  func.func @transform_0(%arg0: i32, %arg1: i32) -> (i32, i32) {
    %c0_i32 = arith.constant 0 : i32
    %c0_i32_0 = arith.constant 0 : i32
    return %c0_i32, %arg1 : i32, i32
  }
  func.func @transform_1(%arg0: i32, %arg1: i32) -> (i32, i32) {
    %c0_i32 = arith.constant 0 : i32
    %c0_i32_0 = arith.constant 0 : i32
    return %c0_i32, %arg1 : i32, i32
  }
  func.func @transform_2(%arg0: i32, %arg1: i32) -> (i32, i32) {
    %c0_i32 = arith.constant 0 : i32
    %c0_i32_0 = arith.constant 0 : i32
    return %c0_i32, %arg1 : i32, i32
  }
  func.func @transform_3(%arg0: i32, %arg1: i32) -> (i32, i32) {
    %c0_i32 = arith.constant 0 : i32
    return %arg1, %arg0 : i32, i32
  }
  func.func @transform_4(%arg0: i32, %arg1: i32) -> (i32, i32) {
    %c0_i32 = arith.constant 0 : i32
    %c0_i32_0 = arith.constant 0 : i32
    return %c0_i32, %arg0 : i32, i32
  }
  func.func @transform_5(%arg0: i32, %arg1: i32) -> (i32, i32) {
    %c0_i32 = arith.constant 0 : i32
    %c0_i32_0 = arith.constant 0 : i32
    return %c0_i32, %arg0 : i32, i32
  }
}

</mosaic_0001>

<bundles_post_ra>
// kernel: tpu_custom_call.1
= control target key start
LH: loop header
LB: loop body
LE: loop exit
PB: predicated region body
PF: predicated region fallthrough
CT: control target
= control target key end

     0   :  { %10 = vsyncpa [#allocation4], 0  ;;  %s408_s0 = inlined_call_operand.hbm [shape: f32[8,128], index: 0, kind: input, shape index: {}]   ;;  %s409_s1 = inlined_call_operand.vmem [shape: f32[1,128], index: 1, kind: input, shape index: {}]   ;;  %s410_s2 = inlined_call_operand.vmem [shape: f32[1,128], index: 2, kind: input, shape index: {}]   ;;  %s411_s3 = inlined_call_operand.hbm [shape: bf16[128,128], index: 3, kind: input, shape index: {}]   ;;  %s412_s4 = inlined_call_operand.vmem [shape: f32[1,128], index: 4, kind: input, shape index: {}]   ;;  %s413_s5 = inlined_call_operand.hbm [shape: f32[8,128], index: 5, kind: output, shape index: {}]  }
   0x1   :  { %11 = vsyncpa [#allocation7], 0 }
   0x2   :  { %12 = vsyncpa [#allocation5], 0  ;;  %s353_s18 = smov [#allocation3]   ;;  %s354_s20 = smov [#allocation6]  }
   0x3   :  { %s19_s19 = sshll.u32 %s353_s18, 4  ;;  %s32_s21 = sshll.u32 %s354_s20, 4  ;;  %s20_s19 = int_to_ptr.vmem [resolvable:$true] %s19_s19  ;;  %s33_s21 = int_to_ptr.vmem [resolvable:$true] %s32_s21 }
   0x4   :  { %s295_s22 = scalar_lea.vmem %s20_s19, 128  ;;  %p300_p1 = scmp.lt.s32.totalorder %s20_s19, %s20_s19 }
   0x5   :  { %p296_p0 = scmp.ne.s32.totalorder %s20_s19, %s295_s22  ;;  %p301_p2 = scmp.lt.s32.totalorder %s295_s22, %s295_s22 }
   0x7   :  { %p302_p3 = por %p301_p2, %p300_p1 }
   0x9   :  { %p303_p4 = pnand %p302_p3, %p296_p0 }
   0xb   :  { %306 = shalt.err (!%p303_p4)
}
   0xc   :  { %22 = dma.hbm_to_vmem [thread:$0]  %s408_s0, 128, %s20_s19, [#allocation4]  }
   0xd   :  { %s315_s25 = scalar_lea.vmem %s33_s21, 1024  ;;  %p320_p6 = scmp.lt.s32.totalorder %s33_s21, %s33_s21 }
   0xe   :  { %p316_p5 = scmp.ne.s32.totalorder %s33_s21, %s315_s25  ;;  %p321_p7 = scmp.lt.s32.totalorder %s315_s25, %s315_s25 }
  0x10   :  { %p322_p8 = por %p321_p7, %p320_p6 }
  0x12   :  { %p323_p9 = pnand %p322_p8, %p316_p5 }
  0x14   :  { %326 = shalt.err (!%p323_p9)
}
  0x15   :  { %s355_s26 = smov 64   ;;  %s356_s27 = smov 4  }
  0x16   :  { %38 = dma.hbm_to_vmem [thread:$0]  %s411_s3, 1024, %s33_s21, [#allocation7], %s355_s26, %s355_s26, %s356_s27  }
  0x17   :  { %347 = dma.done.wait [#allocation4], 128  }
  0x18   :  { %348 = vsyncadd [#allocation4], 4294967168 }
  0x19   :  { %349 = dma.done.wait [#allocation7], 1024  }
  0x1a   :  { %350 = vsyncadd [#allocation7], 4294966272  ;;  %v357_v0 = vmov 0.0   ;;  %vm358_vm0 = vmmov 0   ;;  %v277_v1 = vld [vmem:[#allocation6 + $0x38] sm:$0xff]   ;;  %v278_v2 = vld [vmem:[#allocation6 + $0x30] sm:$0xff]  }
  0x1b   :  { %250 = vmatprep.subr.bf16.mxu0 %v357_v0  ;;  %266 = vmatprep.mubr.msk.bf16.mxu0 %vm358_vm0, %v357_v0  ;;  %v279_v3 = vld [vmem:[#allocation6 + $0x28] sm:$0xff]   ;;  %v53_v4 = vld [vmem:[#allocation3] sm:$0xff]  ;;  %v280_v6 = vld [vmem:[#allocation6 + $0x20] sm:$0xff]   ;;  %s359_s9 = smov [#allocation8]  }
  0x1c   :  { %251 = vmatpush3.bf16.msra.mxu0 %v277_v1  ;;  %v54_v5 = vrot.slane %v53_v4, 4  ;;  %v281_v9 = vld [vmem:[#allocation6 + $0x18] sm:$0xff]   ;;  %v282_v12 = vld [vmem:[#allocation6 + $0x10] sm:$0xff]   ;;  %v283_v15 = vld [vmem:[#allocation6 + $0x8] sm:$0xff]   ;;  %s220_s10 = sshll.u32 %s359_s9, 4  ;;  %s221_s10 = int_to_ptr.vmem [resolvable:$true] %s220_s10 }
  0x1d   :  { %252 = vmatprep.subr.bf16.mxu0 %v357_v0  ;;  %v284_v18 = vld [vmem:[#allocation6] sm:$0xff]   ;;  %v230_v28 = vld [vmem:[%s409_s1] ss:$0 sm:$0xff]  ;;  %s327_s1 = scalar_lea.vmem %s221_s10, 128  ;;  %p332_p11 = scmp.lt.s32.totalorder %s221_s10, %s221_s10 }
  0x1e   :  { %v55_v7 = vadd.f32 %v54_v5, %v53_v4  ;;  %v231_v30 = vld [vmem:[%s410_s2] ss:$0 sm:$0xff]  ;;  %p328_p10 = scmp.ne.s32.totalorder %s221_s10, %s327_s1  ;;  %p333_p12 = scmp.lt.s32.totalorder %s327_s1, %s327_s1 }
  0x1f   :  { %v240_v36 = vld [vmem:[%s412_s4] ss:$0 sm:$0xff] }
  0x20   :  { %253 = vmatpush3.bf16.msra.mxu0 %v278_v2  ;;  %v56_v8 = vrot.slane %v55_v7, 2  ;;  %p334_p13 = por %p333_p12, %p332_p11 }
  0x21   :  { %254 = vmatprep.subr.bf16.mxu0 %v357_v0 }
  0x22   :  { %v57_v10 = vadd.f32 %v56_v8, %v55_v7  ;;  %p335_p0 = pnand %p334_p13, %p328_p10 }
  0x24   :  { %255 = vmatpush3.bf16.msra.mxu0 %v279_v3  ;;  %v58_v11 = vrot.slane %v57_v10, 1 }
  0x25   :  { %256 = vmatprep.subr.bf16.mxu0 %v357_v0 }
  0x26   :  { %v59_v13 = vadd.f32 %v58_v11, %v57_v10 }
  0x28   :  { %257 = vmatpush3.bf16.msra.mxu0 %v280_v6  ;;  %v61_v14 = vmul.f32 0.125, %v59_v13 }
  0x29   :  { %258 = vmatprep.subr.bf16.mxu0 %v357_v0 }
  0x2a   :  { %v62_v16 = vsub.f32 %v53_v4, %v61_v14 }
  0x2c   :  { %259 = vmatpush3.bf16.msra.mxu0 %v281_v9  ;;  %v63_v17 = vmul.f32 %v62_v16, %v62_v16 }
  0x2d   :  { %260 = vmatprep.subr.bf16.mxu0 %v357_v0 }
  0x2e   :  { %v64_v19 = vrot.slane %v63_v17, 4 }
  0x30   :  { %261 = vmatpush3.bf16.msra.mxu0 %v282_v12  ;;  %v65_v20 = vadd.f32 %v64_v19, %v63_v17 }
  0x31   :  { %262 = vmatprep.subr.bf16.mxu0 %v357_v0 }
  0x32   :  { %v66_v21 = vrot.slane %v65_v20, 2 }
  0x34   :  { %263 = vmatpush3.bf16.msra.mxu0 %v283_v15  ;;  %v67_v22 = vadd.f32 %v66_v21, %v65_v20 }
  0x35   :  { %264 = vmatprep.subr.bf16.mxu0 %v357_v0 }
  0x36   :  { %v68_v23 = vrot.slane %v67_v22, 1 }
  0x38   :  { %265 = vmatpush3.bf16.msra.mxu0 %v284_v18  ;;  %v69_v24 = vadd.f32 %v68_v23, %v67_v22 }
  0x3a   :  { %v70_v25 = vmul.f32 0.125, %v69_v24 }
  0x3c   :  { %v71_v26 = vadd.f32 1e-05, %v70_v25 }
  0x3e   :  { %285 = vrsqrt.f32 %v71_v26 }
  0x4b   :  { %v286_v27 = vpop.eup %285 }
  0x4c   :  { %v73_v29 = vmul.f32 %v286_v27, %v62_v16 }
  0x4e   :  { %v81_v31 = vmul.f32 %v230_v28, %v73_v29 }
  0x50   :  { %v89_v32 = vadd.f32 %v231_v30, %v81_v31 }
  0x52   :  { %vm90_vm1 = vcmp.ge.f32.partialorder %v89_v32, 0.0  ;;  %v91_v33 = vmul.f32 0.5, %v89_v32 }
  0x54   :  { %v92_v34 = vsel %vm90_vm1, %v89_v32, %v91_v33 }
  0x55   :  { %v94_v35 = vpack.c.bf16 %v92_v34, %v92_v34 }
  0x57   :  { %267 = vmatmul.mubr.bf16.vlgmr.msra.gmra.mxu0 %v94_v35 }
 0x117   :  { %v193_v37 = vpop.f32.mrf.mxu0 }
 0x118   :  { %v212_v38 = vadd.f32 %v240_v36, %v193_v37 }
 0x119   :  { %v268_v39 = vpop.f32.mrf.mxu0 }
 0x11a   :  { %213 = vst [vmem:[#allocation8] sm:$0xff] %v212_v38 }
 0x11b   :  { %v196_v40 = vpop.f32.mrf.mxu0 }
 0x11c   :  { %338 = shalt.err (!%p335_p0)
}
 0x11d   :  { %223 = dma.vmem_to_hbm [thread:$0]  %s221_s10, 128, %s413_s5, [#allocation5]   ;;  %v269_v41 = vpop.f32.mrf.mxu0 }
 0x11e   :  { %351 = dma.done.wait [#allocation5], 128  }
 0x11f   :  { %352 = vsyncadd [#allocation5], 4294967168 }
 0x120   :  { %227 = vsyncpa [#allocation4], 1 }
 0x121   :  { %228 = vsyncpa [#allocation7], 1 }
 0x122   :  { %229 = vsyncpa [#allocation5], 1 }

</bundles_post_ra>
